<compile_context>
chip_gen: v7x
topology: tpu7x:2x2x1
jax: 0.10.0
libtpu: 0.0.40
codegen_flags: <defaults>
</compile_context>

<pallas_src>
import jax
import jax.numpy as jnp
from jax.experimental import pallas as pl
from jax.experimental.pallas import tpu as pltpu


def _policy_kernel(x_ref, w1_ref, b1_ref, w2_ref, b2_ref, mu_ref, sg_ref):
    # Cast to the compute dtype in-kernel (no-op for f32 weights); MXU matmul
    # with f32 accumulation, then f32 bias add + ReLU on the VPU.
    x = x_ref[...].astype(w1_ref.dtype)
    h = jnp.dot(x, w1_ref[...], preferred_element_type=jnp.float32)
    h = jnp.maximum(h + b1_ref[...], 0.0)

    # Fused output heads: one (tb, H) @ (H, 2A) matmul covers mu and sigma_sq.
    out = jnp.dot(h.astype(w2_ref.dtype), w2_ref[...],
                  preferred_element_type=jnp.float32)
    out = out + b2_ref[...]

    a = mu_ref.shape[1]
    mu_ref[...] = out[:, :a].astype(mu_ref.dtype)
    sg_ref[...] = out[:, a:].astype(sg_ref.dtype)


def prepare_policy_params(params, compute_dtype=jnp.float32):
    """One-time weight prep: fuse the two heads and cast to the MXU operand dtype.

    Call once per parameter set (not per forward) so weight concat/cast never
    shows up as per-call HBM traffic.
    """
    w2cat = jnp.concatenate([params["w2"], params["w2_"]], axis=1)
    b2cat = jnp.concatenate([params["b2"], params["b2_"]], axis=1)
    return {
        "w1": params["w1"].astype(compute_dtype),
        "b1": params["b1"].astype(jnp.float32),     # biases stay f32 (post-acc add)
        "w2cat": w2cat.astype(compute_dtype),
        "b2cat": b2cat.astype(jnp.float32),
    }


def policy_forward(x, prepared, *, block_b=1024):
    """x: (B, num_inputs) f32.  Returns (mu, sigma_sq), each (B, num_outputs) f32."""
    B, D = x.shape
    w1, b1 = prepared["w1"], prepared["b1"]
    w2cat, b2cat = prepared["w2cat"], prepared["b2cat"]
    H = w1.shape[1]
    A2 = w2cat.shape[1]
    A = A2 // 2

    # Batch tile: either the full batch (always a legal full-extent block) or a
    # multiple of 8 so the (8,128) BlockSpec rule holds on every grid step.
    if B <= block_b:
        tb = B
    else:
        tb = max(8, (block_b // 8) * 8)
    grid = (pl.cdiv(B, tb),)

    # Advisory cost estimate (this call is HBM/overhead-bound, not FLOP-bound).
    flops = 2 * B * D * H + 2 * B * H * A2
    bytes_accessed = (
        x.size * x.dtype.itemsize
        + 2 * B * A * 4                                   # mu + sigma_sq (f32)
        + w1.size * w1.dtype.itemsize + b1.size * 4
        + w2cat.size * w2cat.dtype.itemsize + b2cat.size * 4
    )

    mu, sigma_sq = pl.pallas_call(
        _policy_kernel,
        out_shape=(jax.ShapeDtypeStruct((B, A), jnp.float32),
                   jax.ShapeDtypeStruct((B, A), jnp.float32)),
        grid=grid,
        in_specs=[
            pl.BlockSpec((tb, D), lambda i: (i, 0)),      # x: walks the batch
            pl.BlockSpec((D, H), lambda i: (0, 0)),       # W1: VMEM-resident
            pl.BlockSpec((1, H), lambda i: (0, 0)),       # b1
            pl.BlockSpec((H, A2), lambda i: (0, 0)),      # [W2 | W2_]
            pl.BlockSpec((1, A2), lambda i: (0, 0)),      # [b2 | b2_]
        ],
        out_specs=(pl.BlockSpec((tb, A), lambda i: (i, 0)),
                   pl.BlockSpec((tb, A), lambda i: (i, 0))),
        compiler_params=pltpu.CompilerParams(
            dimension_semantics=("parallel",)),
        cost_estimate=pl.CostEstimate(
            flops=flops, transcendentals=0, bytes_accessed=bytes_accessed),
    )(x, w1, b1, w2cat, b2cat)

    return mu, sigma_sq


def init_policy_params(key, num_inputs, hidden_size, num_outputs):
    """Deterministic init mimicking nn.Linear's U(-1/sqrt(fan_in), 1/sqrt(fan_in))."""
    ks = jax.random.split(key, 6)

    def linear(kw, kb, fan_in, fan_out):
        bound = 1.0 / jnp.sqrt(float(fan_in))
        w = jax.random.uniform(kw, (fan_in, fan_out), jnp.float32, -bound, bound)
        b = jax.random.uniform(kb, (1, fan_out), jnp.float32, -bound, bound)
        return w, b

    w1, b1 = linear(ks[0], ks[1], num_inputs, hidden_size)
    w2, b2 = linear(ks[2], ks[3], hidden_size, num_outputs)
    w2s, b2s = linear(ks[4], ks[5], hidden_size, num_outputs)
    return {"w1": w1, "b1": b1, "w2": w2, "b2": b2, "w2_": w2s, "b2_": b2s}


def policy_reference(x, params, compute_dtype=jnp.float32):
    """Pure-JAX reference (optionally with the same reduced-precision operand casts)."""
    cd = compute_dtype
    h = jnp.dot(x.astype(cd), params["w1"].astype(cd),
                preferred_element_type=jnp.float32) + params["b1"]
    h = jnp.maximum(h, 0.0)
    mu = jnp.dot(h.astype(cd), params["w2"].astype(cd),
                 preferred_element_type=jnp.float32) + params["b2"]
    sg = jnp.dot(h.astype(cd), params["w2_"].astype(cd),
                 preferred_element_type=jnp.float32) + params["b2_"]
    return mu, sg


if __name__ == "__main__":
    key = jax.random.PRNGKey(0)
    k_x, k_p, k_x2 = jax.random.split(key, 3)

    batch = 8
    num_inputs = 32     # state dim
    hidden_size = 32
    num_outputs = 16    # action_space.shape[0]

    x = jax.random.normal(k_x, (batch, num_inputs), dtype=jnp.float32)
    params = init_policy_params(k_p, num_inputs, hidden_size, num_outputs)

    # --- default path: f32 operands, single grid step ---------------------
    prepared_f32 = prepare_policy_params(params, compute_dtype=jnp.float32)
    mu, sigma_sq = policy_forward(x, prepared_f32)
    jax.block_until_ready((mu, sigma_sq))

    mu_ref, sg_ref = policy_reference(x, params, compute_dtype=jnp.float32)
    assert mu.shape == (batch, num_outputs) and sigma_sq.shape == (batch, num_outputs)
    assert jnp.allclose(mu, mu_ref, atol=1e-2), "mu mismatch (f32 path)"
    assert jnp.allclose(sigma_sq, sg_ref, atol=1e-2), "sigma_sq mismatch (f32 path)"

    # --- multi-step grid + ragged last block + bf16 operand path ----------
    prepared_bf16 = prepare_policy_params(params, compute_dtype=jnp.bfloat16)
    x2 = jax.random.normal(k_x2, (40, num_inputs), dtype=jnp.float32)
    mu2, sg2 = policy_forward(x2, prepared_bf16, block_b=16)   # grid=(3,), ragged tail
    jax.block_until_ready((mu2, sg2))

    mu2_f32, sg2_f32 = policy_reference(x2, params, compute_dtype=jnp.float32)
    mu2_bf, sg2_bf = policy_reference(x2, params, compute_dtype=jnp.bfloat16)
    assert mu2.shape == (40, num_outputs) and sg2.shape == (40, num_outputs)
    assert jnp.allclose(mu2, mu2_bf, atol=1e-3), "mu mismatch (bf16 ref, gridded)"
    assert jnp.allclose(sg2, sg2_bf, atol=1e-3), "sigma_sq mismatch (bf16 ref, gridded)"
    assert jnp.allclose(mu2, mu2_f32, atol=5e-2), "mu mismatch (f32 ref, gridded)"
    assert jnp.allclose(sg2, sg2_f32, atol=5e-2), "sigma_sq mismatch (f32 ref, gridded)"

    # TODO(synk): the PyTorch spec returns the raw linear sigma_sq head (no
    # softplus/exp); semantics are preserved as-is.
    print("KERNEL_OK")
</pallas_src>

<mosaic_0001>
module attributes {stable_mosaic.version = 11 : i64} {
  func.func @_policy_kernel(%arg0: i32, %arg1: memref<8x32xf32, #tpu.memory_space<vmem>>, %arg2: memref<32x32xf32, #tpu.memory_space<vmem>>, %arg3: memref<1x32xf32, #tpu.memory_space<vmem>>, %arg4: memref<32x32xf32, #tpu.memory_space<vmem>>, %arg5: memref<1x32xf32, #tpu.memory_space<vmem>>, %arg6: memref<8x16xf32, #tpu.memory_space<vmem>>, %arg7: memref<8x16xf32, #tpu.memory_space<vmem>>) attributes {dimension_semantics = [#tpu.dimension_semantics<parallel>], iteration_bounds = array<i64: 1>, scalar_prefetch = 0 : i64, scratch_operands = 0 : i64, tpu.core_type = #tpu.core_type<tc>, window_params = [{transform_indices = @transform_0, window_bounds = array<i64: 8, 32>}, {pipeline_mode = #tpu.pipeline_mode<synchronous>, transform_indices = @transform_1, window_bounds = array<i64: 32, 32>}, {pipeline_mode = #tpu.pipeline_mode<synchronous>, transform_indices = @transform_2, window_bounds = array<i64: 1, 32>}, {pipeline_mode = #tpu.pipeline_mode<synchronous>, transform_indices = @transform_3, window_bounds = array<i64: 32, 32>}, {pipeline_mode = #tpu.pipeline_mode<synchronous>, transform_indices = @transform_4, window_bounds = array<i64: 1, 32>}, {transform_indices = @transform_5, window_bounds = array<i64: 8, 16>}, {transform_indices = @transform_6, window_bounds = array<i64: 8, 16>}]} {
    %c0 = arith.constant 0 : index
    %c0_0 = arith.constant 0 : index
    %0 = vector.load %arg1[%c0, %c0_0] : memref<8x32xf32, #tpu.memory_space<vmem>>, vector<8x32xf32>
    %c0_1 = arith.constant 0 : index
    %c0_2 = arith.constant 0 : index
    %1 = vector.load %arg2[%c0_1, %c0_2] : memref<32x32xf32, #tpu.memory_space<vmem>>, vector<32x32xf32>
    %cst = arith.constant dense<0.000000e+00> : vector<8x32xf32>
    %2 = tpu.matmul %0, %1, %cst {dimension_numbers = #tpu.dot_dimension_numbers<[1], [0], [0], [1], [0, 0, 1, 1], [], []>} : vector<8x32xf32>, vector<32x32xf32>, vector<8x32xf32> -> vector<8x32xf32>
    %c0_3 = arith.constant 0 : index
    %c0_4 = arith.constant 0 : index
    %3 = vector.load %arg3[%c0_3, %c0_4] : memref<1x32xf32, #tpu.memory_space<vmem>>, vector<1x32xf32>
    %4 = vector.broadcast %3 : vector<1x32xf32> to vector<8x32xf32>
    %5 = arith.addf %2, %4 : vector<8x32xf32>
    %cst_5 = arith.constant 0.000000e+00 : f32
    %6 = vector.broadcast %cst_5 : f32 to vector<8x32xf32>
    %7 = arith.maximumf %5, %6 : vector<8x32xf32>
    %c0_6 = arith.constant 0 : index
    %c0_7 = arith.constant 0 : index
    %8 = vector.load %arg4[%c0_6, %c0_7] : memref<32x32xf32, #tpu.memory_space<vmem>>, vector<32x32xf32>
    %cst_8 = arith.constant dense<0.000000e+00> : vector<8x32xf32>
    %9 = tpu.matmul %7, %8, %cst_8 {dimension_numbers = #tpu.dot_dimension_numbers<[1], [0], [0], [1], [0, 0, 1, 1], [], []>} : vector<8x32xf32>, vector<32x32xf32>, vector<8x32xf32> -> vector<8x32xf32>
    %c0_9 = arith.constant 0 : index
    %c0_10 = arith.constant 0 : index
    %10 = vector.load %arg5[%c0_9, %c0_10] : memref<1x32xf32, #tpu.memory_space<vmem>>, vector<1x32xf32>
    %11 = vector.broadcast %10 : vector<1x32xf32> to vector<8x32xf32>
    %12 = arith.addf %9, %11 : vector<8x32xf32>
    %13 = vector.extract_strided_slice %12 {offsets = [0, 0], sizes = [8, 16], strides = [1, 1]} : vector<8x32xf32> to vector<8x16xf32>
    %c0_11 = arith.constant 0 : index
    %c0_12 = arith.constant 0 : index
    %14 = vector.load %arg6[%c0_11, %c0_12] : memref<8x16xf32, #tpu.memory_space<vmem>>, vector<8x16xf32>
    tpu.vector_store %arg6[%c0_11, %c0_12], %13 {strides = array<i32>} : memref<8x16xf32, #tpu.memory_space<vmem>>, vector<8x16xf32>,
    %15 = vector.extract_strided_slice %12 {offsets = [0, 16], sizes = [8, 16], strides = [1, 1]} : vector<8x32xf32> to vector<8x16xf32>
    %c0_13 = arith.constant 0 : index
    %c0_14 = arith.constant 0 : index
    %16 = vector.load %arg7[%c0_13, %c0_14] : memref<8x16xf32, #tpu.memory_space<vmem>>, vector<8x16xf32>
    tpu.vector_store %arg7[%c0_13, %c0_14], %15 {strides = array<i32>} : memref<8x16xf32, #tpu.memory_space<vmem>>, vector<8x16xf32>,
    return
  }
  func.func @transform_0(%arg0: i32) -> (i32, i32) {
    %c0_i32 = arith.constant 0 : i32
    %c0_i32_0 = arith.constant 0 : i32
    return %arg0, %c0_i32 : i32, i32
  }
  func.func @transform_1(%arg0: i32) -> (i32, i32) {
    %c0_i32 = arith.constant 0 : i32
    %c0_i32_0 = arith.constant 0 : i32
    %c0_i32_1 = arith.constant 0 : i32
    return %c0_i32, %c0_i32_0 : i32, i32
  }
  func.func @transform_2(%arg0: i32) -> (i32, i32) {
    %c0_i32 = arith.constant 0 : i32
    %c0_i32_0 = arith.constant 0 : i32
    %c0_i32_1 = arith.constant 0 : i32
    return %c0_i32, %c0_i32_0 : i32, i32
  }
  func.func @transform_3(%arg0: i32) -> (i32, i32) {
    %c0_i32 = arith.constant 0 : i32
    %c0_i32_0 = arith.constant 0 : i32
    %c0_i32_1 = arith.constant 0 : i32
    return %c0_i32, %c0_i32_0 : i32, i32
  }
  func.func @transform_4(%arg0: i32) -> (i32, i32) {
    %c0_i32 = arith.constant 0 : i32
    %c0_i32_0 = arith.constant 0 : i32
    %c0_i32_1 = arith.constant 0 : i32
    return %c0_i32, %c0_i32_0 : i32, i32
  }
  func.func @transform_5(%arg0: i32) -> (i32, i32) {
    %c0_i32 = arith.constant 0 : i32
    %c0_i32_0 = arith.constant 0 : i32
    return %arg0, %c0_i32 : i32, i32
  }
  func.func @transform_6(%arg0: i32) -> (i32, i32) {
    %c0_i32 = arith.constant 0 : i32
    %c0_i32_0 = arith.constant 0 : i32
    return %arg0, %c0_i32 : i32, i32
  }
}

</mosaic_0001>

<bundles_post_ra>
// kernel: tpu_custom_call.1
= control target key start
LH: loop header
LB: loop body
LE: loop exit
PB: predicated region body
PF: predicated region fallthrough
CT: control target
= control target key end

     0   :  { %12 = vsyncpa [#allocation3], 0  ;;  %s568_s0 = inlined_call_operand.hbm [shape: f32[8,32], index: 0, kind: input, shape index: {}]   ;;  %s569_s1 = inlined_call_operand.hbm [shape: f32[32,32], index: 1, kind: input, shape index: {}]   ;;  %s570_s2 = inlined_call_operand.vmem [shape: f32[1,32], index: 2, kind: input, shape index: {}]   ;;  %s571_s3 = inlined_call_operand.hbm [shape: f32[32,32], index: 3, kind: input, shape index: {}]   ;;  %s572_s4 = inlined_call_operand.vmem [shape: f32[1,32], index: 4, kind: input, shape index: {}]   ;;  %s573_s5 = inlined_call_operand.hbm [shape: f32[8,16], index: 5, kind: output, shape index: {0}]   ;;  %s574_s6 = inlined_call_operand.hbm [shape: f32[8,16], index: 6, kind: output, shape index: {1}]  }
   0x1   :  { %13 = vsyncpa [#allocation6], 0 }
   0x2   :  { %14 = vsyncpa [#allocation4], 0 }
   0x3   :  { %15 = vsyncpa [#allocation10], 0  ;;  %s448_s21 = smov [#allocation5]   ;;  %s330_s25 = scalar_lea.hbm %s569_s1, 512 }
   0x4   :  { %s31_s22 = sshll.u32 %s448_s21, 4  ;;  %p331_p0 = scmp.ne.s32.totalorder %s569_s1, %s330_s25  ;;  %s32_s22 = int_to_ptr.vmem [resolvable:$true] %s31_s22 }
   0x5   :  { %p334_p1 = scmp.lt.u32.totalorder %s330_s25, %s569_s1 }
   0x7   :  { %p336_p2 = pnand %p334_p1, %p331_p0 }
   0x9   :  { %339 = shalt.err (!%p336_p2)
}
   0xa   :  { %s340_s30 = scalar_lea.vmem %s32_s22, 512  ;;  %p345_p4 = scmp.lt.s32.totalorder %s32_s22, %s32_s22 }
   0xb   :  { %p341_p3 = scmp.ne.s32.totalorder %s32_s22, %s340_s30  ;;  %p346_p5 = scmp.lt.s32.totalorder %s340_s30, %s340_s30 }
   0xd   :  { %p347_p6 = por %p346_p5, %p345_p4 }
   0xf   :  { %p348_p7 = pnand %p347_p6, %p341_p3 }
  0x11   :  { %351 = shalt.err (!%p348_p7)
}
  0x12   :  { %s449_s7 = smov 128   ;;  %s450_s8 = smov 8  }
  0x13   :  { %37 = dma.hbm_to_vmem [thread:$0]  %s569_s1, 512, %s32_s22, [#allocation6], %s449_s7, %s449_s7, %s450_s8  }
  0x14   :  { %s451_s11 = smov [#allocation2]   ;;  %s452_s13 = smov [#allocation7]  }
  0x15   :  { %s22_s12 = sshll.u32 %s451_s11, 4  ;;  %s45_s14 = sshll.u32 %s452_s13, 4  ;;  %s23_s12 = int_to_ptr.vmem [resolvable:$true] %s22_s12  ;;  %s46_s14 = int_to_ptr.vmem [resolvable:$true] %s45_s14 }
  0x16   :  { %s352_s17 = scalar_lea.hbm %s568_s0, 128 }
  0x17   :  { %p353_p8 = scmp.ne.s32.totalorder %s568_s0, %s352_s17  ;;  %p356_p9 = scmp.lt.u32.totalorder %s352_s17, %s568_s0 }
  0x19   :  { %p358_p10 = pnand %p356_p9, %p353_p8 }
  0x1b   :  { %361 = shalt.err (!%p358_p10)
}
  0x1c   :  { %s362_s1 = scalar_lea.vmem %s23_s12, 128  ;;  %p367_p12 = scmp.lt.s32.totalorder %s23_s12, %s23_s12 }
  0x1d   :  { %p363_p11 = scmp.ne.s32.totalorder %s23_s12, %s362_s1  ;;  %p368_p13 = scmp.lt.s32.totalorder %s362_s1, %s362_s1 }
  0x1f   :  { %p369_p0 = por %p368_p13, %p367_p12 }
  0x21   :  { %p370_p1 = pnand %p369_p0, %p363_p11 }
  0x23   :  { %373 = shalt.err (!%p370_p1)
}
  0x24   :  { %25 = dma.hbm_to_vmem [thread:$0]  %s568_s0, 128, %s23_s12, [#allocation3]  }
  0x25   :  { %s374_s26 = scalar_lea.hbm %s571_s3, 512 }
  0x26   :  { %p375_p2 = scmp.ne.s32.totalorder %s571_s3, %s374_s26  ;;  %p378_p3 = scmp.lt.u32.totalorder %s374_s26, %s571_s3 }
  0x28   :  { %p380_p4 = pnand %p378_p3, %p375_p2 }
  0x2a   :  { %383 = shalt.err (!%p380_p4)
}
  0x2b   :  { %s384_s9 = scalar_lea.vmem %s46_s14, 512  ;;  %p389_p6 = scmp.lt.s32.totalorder %s46_s14, %s46_s14 }
  0x2c   :  { %p385_p5 = scmp.ne.s32.totalorder %s46_s14, %s384_s9  ;;  %p390_p7 = scmp.lt.s32.totalorder %s384_s9, %s384_s9 }
  0x2e   :  { %p391_p8 = por %p390_p7, %p389_p6 }
  0x30   :  { %p392_p9 = pnand %p391_p8, %p385_p5 }
  0x32   :  { %395 = shalt.err (!%p392_p9)
}
  0x33   :  { %51 = dma.hbm_to_vmem [thread:$0]  %s571_s3, 512, %s46_s14, [#allocation6], %s449_s7, %s449_s7, %s450_s8  }
  0x34   :  { %440 = dma.done.wait [#allocation3], 128  }
  0x35   :  { %441 = vsyncadd [#allocation3], 4294967168 }
  0x36   :  { %442 = dma.done.wait [#allocation6], 1024  }
  0x37   :  { %443 = vsyncadd [#allocation6], 4294966272  ;;  %v453_v0 = vmov 0.0|0.0   ;;  %vm454_vm0 = vmmov 0   ;;  %v455_v1 = vmov 0.0   ;;  %v64_v2 = vld [vmem:[#allocation5] sm:$0xff] }
  0x38   :  { %307 = vmatprep.subr.bf16.mxu0 %v453_v0  ;;  %293 = vmatprep.mubr.msk.f32.mxu0 %vm454_vm0, %v455_v1  ;;  %v65_v3 = vld [vmem:[#allocation5 + $0x8] sm:$0xff]  ;;  %v66_v4 = vld [vmem:[#allocation5 + $0x10] sm:$0xff]  ;;  %v67_v6 = vld [vmem:[#allocation5 + $0x18] sm:$0xff]  ;;  %vm75_vm1 = vcmask 261120   ;;  %s456_s12 = smov [#allocation8]   ;;  %vm234_vm2 = vcmask 130048  }
  0x39   :  { %313 = vmatprep.subr.bf16.mxu1 %v453_v0  ;;  %304 = vmatprep.mubr.msk.f32.mxu1 %vm454_vm0, %v455_v1  ;;  %v308_v5 = vpack.c.bf16 %v65_v3, %v64_v2  ;;  %v150_v7 = vld [vmem:[#allocation7] sm:$0xff]  ;;  %v151_v8 = vld [vmem:[#allocation7 + $0x8] sm:$0xff]  ;;  %v311_v9 = vpack.c.bf16 %v67_v6, %v66_v4  ;;  %v63_v11 = vld [vmem:[#allocation2] sm:$0xff]  ;;  %s247_s13 = sshll.u32 %s456_s12, 4  ;;  %s457_s14 = smov 112   ;;  %s248_s13 = int_to_ptr.vmem [resolvable:$true] %s247_s13 }
  0x3a   :  { %v314_v10 = vpack.c.bf16 %v151_v8, %v150_v7  ;;  %v152_v12 = vld [vmem:[#allocation7 + $0x10] sm:$0xff]  ;;  %v153_v13 = vld [vmem:[#allocation7 + $0x18] sm:$0xff]  ;;  %p401_p11 = scmp.lt.s32.totalorder %s248_s13, %s248_s13 }
  0x3b   :  { %309 = vmatpush3.bf16.msra.mxu0 %v308_v5  ;;  %v317_v14 = vpack.c.bf16 %v153_v13, %v152_v12  ;;  %v271_v15 = vld [vmem:[%s570_s2] ss:$0 sm:$0xff]  ;;  %s396_s2 = scalar_lea.vmem %s248_s13, 128 }
  0x3c   :  { %310 = vmatprep.subr.bf16.mxu0 %v453_v0  ;;  %315 = vmatpush3.bf16.msra.mxu1 %v314_v10  ;;  %v273_v20 = vld [vmem:[%s572_s4] ss:$0 sm:$0xff]  ;;  %p397_p10 = scmp.ne.s32.totalorder %s248_s13, %s396_s2  ;;  %p402_p12 = scmp.lt.s32.totalorder %s396_s2, %s396_s2 }
  0x3d   :  { %316 = vmatprep.subr.bf16.mxu1 %v453_v0 }
  0x3e   :  { %p403_p13 = por %p402_p12, %p401_p11 }
  0x3f   :  { %312 = vmatpush3.bf16.msra.mxu0 %v311_v9 }
  0x40   :  { %318 = vmatpush3.bf16.msra.mxu1 %v317_v14  ;;  %p404_p0 = pnand %p403_p13, %p397_p10 }
  0x42   :  { %294 = vmatmul.mubr.msk.f32.vlgmr.msra.gmra.mrb[0].mxu0 %vm75_vm1, %v63_v11 }
 0x115   :  { %v145_v16 = vpop.f32.mrb[0].mxu0 }
 0x116   :  { %v146_v17 = vadd.f32 %v271_v15, %v145_v16  ;;  %v295_v18 = vpop.f32.mrb[1].mxu0 }
 0x118   :  { %v149_v19 = vmax.f32 %v146_v17, 0.0 }
 0x11a   :  { %305 = vmatmul.mubr.msk.f32.vlgmr.msra.gmra.mrb[0].mxu1 %vm75_vm1, %v149_v19 }
 0x1ed   :  { %v230_v21 = vpop.f32.mrb[0].mxu1 }
 0x1ee   :  { %v231_v22 = vadd.f32 %v273_v20, %v230_v21  ;;  %v306_v23 = vpop.f32.mrb[1].mxu1 }
 0x1f0   :  { %237 = vrot.lane.b32.xlu0 %v231_v22, %s457_s14  ;;  %235 = vst.msk [vmem:[#allocation8] sm:$0xff] %vm234_vm2, %v231_v22 }
 0x1f1   :  { %407 = shalt.err (!%p404_p0)
}
 0x1f2   :  { %s408_s16 = scalar_lea.hbm %s573_s5, 128 }
 0x1f3   :  { %p409_p1 = scmp.ne.s32.totalorder %s573_s5, %s408_s16  ;;  %p412_p2 = scmp.lt.u32.totalorder %s408_s16, %s573_s5 }
 0x1f5   :  { %p414_p3 = pnand %p412_p2, %p409_p1 }
 0x1f7   :  { %417 = shalt.err (!%p414_p3)
}
 0x1f8   :  { %250 = dma.vmem_to_hbm [thread:$0]  %s248_s13, 128, %s573_s5, [#allocation4]  }
 0x1f9   :  { %s458_s22 = smov [#allocation9]  }
 0x1fa   :  { %s257_s23 = sshll.u32 %s458_s22, 4  ;;  %s258_s23 = int_to_ptr.vmem [resolvable:$true] %s257_s23 }
 0x1fb   :  { %s418_s24 = scalar_lea.vmem %s258_s23, 128  ;;  %p423_p5 = scmp.lt.s32.totalorder %s258_s23, %s258_s23 }
 0x1fc   :  { %p419_p4 = scmp.ne.s32.totalorder %s258_s23, %s418_s24  ;;  %p424_p6 = scmp.lt.s32.totalorder %s418_s24, %s418_s24 }
 0x1fe   :  { %p425_p7 = por %p424_p6, %p423_p5 }
 0x200   :  { %p426_p8 = pnand %p425_p7, %p419_p4 }
 0x262   :  { %v238_v24 = vpop.permute.xlu0 %237 }
 0x263   :  { %240 = vst.msk [vmem:[#allocation9] sm:$0xff] %vm234_vm2, %v238_v24 }
 0x264   :  { %429 = shalt.err (!%p426_p8)
}
 0x265   :  { %s430_s27 = scalar_lea.hbm %s574_s6, 128 }
 0x266   :  { %p431_p9 = scmp.ne.s32.totalorder %s574_s6, %s430_s27  ;;  %p434_p10 = scmp.lt.u32.totalorder %s430_s27, %s574_s6 }
 0x268   :  { %p436_p11 = pnand %p434_p10, %p431_p9 }
 0x26a   :  { %439 = shalt.err (!%p436_p11)
}
 0x26b   :  { %260 = dma.vmem_to_hbm [thread:$0]  %s258_s23, 128, %s574_s6, [#allocation10]  }
 0x26c   :  { %444 = dma.done.wait [#allocation4], 128  }
 0x26d   :  { %445 = vsyncadd [#allocation4], 4294967168 }
 0x26e   :  { %446 = dma.done.wait [#allocation10], 128  }
 0x26f   :  { %447 = vsyncadd [#allocation10], 4294967168 }
 0x270   :  { %267 = vsyncpa [#allocation3], 1 }
 0x271   :  { %268 = vsyncpa [#allocation6], 1 }
 0x272   :  { %269 = vsyncpa [#allocation4], 1 }
 0x273   :  { %270 = vsyncpa [#allocation10], 1 }

</bundles_post_ra>
